<compile_context>
chip_gen: v6e
topology: v6e:2x2x1
jax: 0.10.0
libtpu: 0.0.40
codegen_flags: <defaults>
</compile_context>

<pallas_src>
import functools
import math

import jax
import jax.numpy as jnp
from jax import lax
from jax.experimental import pallas as pl
from jax.experimental.pallas import tpu as pltpu


_NEG_INF = -1e30  # finite "minus infinity": avoids inf-inf NaNs in masked math


def _round_up(x, m):
    return ((x + m - 1) // m) * m


def _flash_attention_kernel(q_ref, k_ref, v_ref, o_ref,
                            m_sc, l_sc, acc_sc, *,
                            scale, block_k, kv_len, kv_len_padded):
    # q_ref: (1, tq, Dp)  k_ref: (1, tk, Dp)  v_ref: (1, tk, Dvp)
    # o_ref: (1, tq, Dvp) scratch: m/l (tq, 1) fp32, acc (tq, Dvp) fp32
    kv_idx = pl.program_id(2)

    @pl.when(kv_idx == 0)
    def _init():
        m_sc[...] = jnp.full_like(m_sc, _NEG_INF)
        l_sc[...] = jnp.zeros_like(l_sc)
        acc_sc[...] = jnp.zeros_like(acc_sc)

    # Fold 1/sqrt(d) into the (tq, D) Q tile (much smaller than (tq, tk) scores).
    # Keeps the input dtype so bf16 callers feed the MXU bf16 operands.
    q = q_ref[0] * scale            # (tq, Dp)
    k = k_ref[0]                    # (tk, Dp)
    v = v_ref[0]                    # (tk, Dvp)

    # scores = Q @ K^T without an explicit transpose: contract last dims directly.
    s = lax.dot_general(q, k,
                        dimension_numbers=(((1,), (1,)), ((), ())),
                        preferred_element_type=jnp.float32)  # (tq, tk) fp32

    # Mask key columns added by padding (static branch: only emitted if needed).
    if kv_len != kv_len_padded:
        col = kv_idx * block_k + lax.broadcasted_iota(jnp.int32, s.shape, 1)
        s = jnp.where(col < kv_len, s, _NEG_INF)

    # Online (flash) softmax update — fp32 throughout for stability.
    m_prev = m_sc[...]
    m_new = jnp.maximum(m_prev, jnp.max(s, axis=-1, keepdims=True))
    alpha = jnp.exp(m_prev - m_new)
    p = jnp.exp(s - m_new)

    l_sc[...] = alpha * l_sc[...] + jnp.sum(p, axis=-1, keepdims=True)
    acc_sc[...] = alpha * acc_sc[...] + jnp.dot(
        p.astype(v.dtype), v, preferred_element_type=jnp.float32)
    m_sc[...] = m_new

    @pl.when(kv_idx == pl.num_programs(2) - 1)
    def _finalize():
        # Normalize the (tq, Dv) accumulator once instead of the (tq, tk) probs.
        inv_l = pl.reciprocal(l_sc[...], approx=False)
        o_ref[0] = (acc_sc[...] * inv_l).astype(o_ref.dtype)


@functools.partial(jax.jit, static_argnames=("block_q_max", "block_k_max"))
def dot_product_attention(queries, keys, values, *,
                          block_q_max=256, block_k_max=512):
    B, Tq, D = queries.shape
    Bk, Tk, Dk = keys.shape
    Bv, Tkv, Dv = values.shape
    assert (Bk, Bv) == (B, B) and Dk == D and Tkv == Tk

    dtype = queries.dtype
    itemsize = jnp.dtype(dtype).itemsize
    sub = 16 if dtype == jnp.bfloat16 else 8

    # Tile sizes: cap at a v7x-friendly budget, shrink for small problems.
    block_q = min(block_q_max, _round_up(Tq, sub))
    block_k = min(block_k_max, _round_up(Tk, 128))

    # Lane-dense padding: feature dims to multiples of 128, seq dims to tiles.
    Tq_p = _round_up(Tq, block_q)
    Tk_p = _round_up(Tk, block_k)
    D_p = _round_up(D, 128)
    Dv_p = _round_up(Dv, 128)

    q_p = jnp.pad(queries, ((0, 0), (0, Tq_p - Tq), (0, D_p - D)))
    k_p = jnp.pad(keys, ((0, 0), (0, Tk_p - Tk), (0, D_p - D)))
    v_p = jnp.pad(values, ((0, 0), (0, Tk_p - Tk), (0, Dv_p - Dv)))

    grid = (B, Tq_p // block_q, Tk_p // block_k)

    kernel = functools.partial(
        _flash_attention_kernel,
        scale=1.0 / math.sqrt(D),      # scale uses the *unpadded* d, as in PyTorch
        block_k=block_k,
        kv_len=Tk,
        kv_len_padded=Tk_p,
    )

    # VMEM budget from tile arithmetic (double-buffered I/O blocks + fp32 scratch),
    # 2x headroom, capped at 64 MiB so it also fits v7x's physical VMEM.
    vmem_bytes = 2 * (block_q * D_p + block_k * D_p
                      + block_k * Dv_p + block_q * Dv_p) * itemsize
    vmem_bytes += block_q * (Dv_p + 2) * 4
    vmem_limit = int(min(64 * 1024 * 1024,
                         max(2 * vmem_bytes + (4 << 20), 32 * 1024 * 1024)))

    # Advisory cost for XLA's scheduler.
    flops = 2 * B * Tq * Tk * D + 2 * B * Tq * Tk * Dv
    bytes_accessed = (queries.size + keys.size + values.size
                      + B * Tq * Dv) * itemsize
    cost = pl.CostEstimate(flops=flops,
                           transcendentals=B * Tq * Tk,
                           bytes_accessed=bytes_accessed)

    out = pl.pallas_call(
        kernel,
        out_shape=jax.ShapeDtypeStruct((B, Tq_p, Dv_p), dtype),
        grid_spec=pltpu.PrefetchScalarGridSpec(
            num_scalar_prefetch=0,
            grid=grid,
            in_specs=[
                pl.BlockSpec((1, block_q, D_p), lambda b, qi, ki: (b, qi, 0)),
                pl.BlockSpec((1, block_k, D_p), lambda b, qi, ki: (b, ki, 0)),
                pl.BlockSpec((1, block_k, Dv_p), lambda b, qi, ki: (b, ki, 0)),
            ],
            out_specs=pl.BlockSpec((1, block_q, Dv_p),
                                   lambda b, qi, ki: (b, qi, 0)),
            scratch_shapes=[
                pltpu.VMEM((block_q, 1), jnp.float32),      # running max m
                pltpu.VMEM((block_q, 1), jnp.float32),      # running denom l
                pltpu.VMEM((block_q, Dv_p), jnp.float32),   # output accumulator
            ],
        ),
        compiler_params=pltpu.CompilerParams(
            dimension_semantics=("parallel", "parallel", "arbitrary"),
            vmem_limit_bytes=vmem_limit,
        ),
        cost_estimate=cost,
    )(q_p, k_p, v_p)

    return out[:, :Tq, :Dv]


def _reference(queries, keys, values):
    d = queries.shape[-1]
    scores = jnp.einsum("bqd,bkd->bqk", queries, keys) / math.sqrt(d)
    attn = jax.nn.softmax(scores, axis=-1)
    return jnp.einsum("bqk,bkv->bqv", attn, values)


if __name__ == "__main__":
    key = jax.random.PRNGKey(0)
    kq, kk, kv = jax.random.split(key, 3)

    B, Tq, Tk, D, Dv = 2, 8, 8, 32, 32
    queries = jax.random.normal(kq, (B, Tq, D), dtype=jnp.float32)
    keys = jax.random.normal(kk, (B, Tk, D), dtype=jnp.float32)
    values = jax.random.normal(kv, (B, Tk, Dv), dtype=jnp.float32)

    out = dot_product_attention(queries, keys, values)
    out = jax.block_until_ready(out)

    ref = _reference(queries, keys, values)
    assert out.shape == (B, Tq, Dv)
    assert jnp.allclose(out, ref, atol=2e-5, rtol=2e-5), "mismatch vs reference"

    print("KERNEL_OK")
</pallas_src>

<mosaic_0001>
module attributes {stable_mosaic.version = 11 : i64} {
  func.func @_flash_attention_kernel(%arg0: i32, %arg1: i32, %arg2: i32, %arg3: memref<1x8x128xf32, #tpu.memory_space<vmem>>, %arg4: memref<1x128x128xf32, #tpu.memory_space<vmem>>, %arg5: memref<1x128x128xf32, #tpu.memory_space<vmem>>, %arg6: memref<1x8x128xf32, #tpu.memory_space<vmem>>, %arg7: memref<8x1xf32, #tpu.memory_space<vmem>>, %arg8: memref<8x1xf32, #tpu.memory_space<vmem>>, %arg9: memref<8x128xf32, #tpu.memory_space<vmem>>) attributes {dimension_semantics = [#tpu.dimension_semantics<parallel>, #tpu.dimension_semantics<parallel>, #tpu.dimension_semantics<arbitrary>], iteration_bounds = array<i64: 2, 1, 1>, scalar_prefetch = 0 : i64, scratch_operands = 3 : i64, tpu.core_type = #tpu.core_type<tc>, window_params = [{transform_indices = @transform_0, window_bounds = array<i64: 1, 8, 128>}, {transform_indices = @transform_1, window_bounds = array<i64: 1, 128, 128>}, {transform_indices = @transform_2, window_bounds = array<i64: 1, 128, 128>}, {transform_indices = @transform_3, window_bounds = array<i64: 1, 8, 128>}]} {
    %c0_i32 = arith.constant 0 : i32
    %0 = arith.cmpi eq, %arg2, %c0_i32 : i32
    %1 = arith.extui %0 : i1 to i32
    %c0_i32_0 = arith.constant 0 : i32
    %2 = arith.cmpi ne, %1, %c0_i32_0 : i32
    scf.if %2 {
      %cst_28 = arith.constant -1.000000e+30 : f32
      %45 = vector.broadcast %cst_28 : f32 to vector<8x1xf32>
      %c0_29 = arith.constant 0 : index
      %c0_30 = arith.constant 0 : index
      %46 = vector.load %arg7[%c0_29, %c0_30] : memref<8x1xf32, #tpu.memory_space<vmem>>, vector<8x1xf32>
      tpu.vector_store %arg7[%c0_29, %c0_30], %45 {strides = array<i32>} : memref<8x1xf32, #tpu.memory_space<vmem>>, vector<8x1xf32>,
      %cst_31 = arith.constant 0.000000e+00 : f32
      %47 = vector.broadcast %cst_31 : f32 to vector<8x1xf32>
      %c0_32 = arith.constant 0 : index
      %c0_33 = arith.constant 0 : index
      %48 = vector.load %arg8[%c0_32, %c0_33] : memref<8x1xf32, #tpu.memory_space<vmem>>, vector<8x1xf32>
      tpu.vector_store %arg8[%c0_32, %c0_33], %47 {strides = array<i32>} : memref<8x1xf32, #tpu.memory_space<vmem>>, vector<8x1xf32>,
      %cst_34 = arith.constant 0.000000e+00 : f32
      %49 = vector.broadcast %cst_34 : f32 to vector<8x128xf32>
      %c0_35 = arith.constant 0 : index
      %c0_36 = arith.constant 0 : index
      %50 = vector.load %arg9[%c0_35, %c0_36] : memref<8x128xf32, #tpu.memory_space<vmem>>, vector<8x128xf32>
      tpu.vector_store %arg9[%c0_35, %c0_36], %49 {strides = array<i32>} : memref<8x128xf32, #tpu.memory_space<vmem>>, vector<8x128xf32>,
    } else {
    }
    %c0 = arith.constant 0 : index
    %c0_1 = arith.constant 0 : index
    %c0_2 = arith.constant 0 : index
    %3 = vector.load %arg3[%c0, %c0_1, %c0_2] : memref<1x8x128xf32, #tpu.memory_space<vmem>>, vector<1x8x128xf32>
    %4 = vector.shape_cast %3 : vector<1x8x128xf32> to vector<8x128xf32>
    %cst = arith.constant 0.176776692 : f32
    %5 = vector.broadcast %cst : f32 to vector<8x128xf32>
    %6 = arith.mulf %4, %5 : vector<8x128xf32>
    %c0_3 = arith.constant 0 : index
    %c0_4 = arith.constant 0 : index
    %c0_5 = arith.constant 0 : index
    %7 = vector.load %arg4[%c0_3, %c0_4, %c0_5] : memref<1x128x128xf32, #tpu.memory_space<vmem>>, vector<1x128x128xf32>
    %8 = vector.shape_cast %7 : vector<1x128x128xf32> to vector<128x128xf32>
    %c0_6 = arith.constant 0 : index
    %c0_7 = arith.constant 0 : index
    %c0_8 = arith.constant 0 : index
    %9 = vector.load %arg5[%c0_6, %c0_7, %c0_8] : memref<1x128x128xf32, #tpu.memory_space<vmem>>, vector<1x128x128xf32>
    %10 = vector.shape_cast %9 : vector<1x128x128xf32> to vector<128x128xf32>
    %cst_9 = arith.constant dense<0.000000e+00> : vector<8x128xf32>
    %11 = tpu.matmul %6, %8, %cst_9 {dimension_numbers = #tpu.dot_dimension_numbers<[1], [1], [0], [0], [0, 0, 1, 0], [], []>} : vector<8x128xf32>, vector<128x128xf32>, vector<8x128xf32> -> vector<8x128xf32>
    %c128_i32 = arith.constant 128 : i32
    %12 = arith.muli %arg2, %c128_i32 : i32
    %13 = tpu.iota {dimensions = array<i32: 1>} : vector<8x128xi32>
    %14 = vector.broadcast %12 : i32 to vector<8x128xi32>
    %15 = arith.addi %14, %13 : vector<8x128xi32>
    %c8_i32 = arith.constant 8 : i32
    %16 = vector.broadcast %c8_i32 : i32 to vector<8x128xi32>
    %17 = arith.cmpi slt, %15, %16 : vector<8x128xi32>
    %cst_10 = arith.constant -1.000000e+30 : f32
    %18 = vector.broadcast %cst_10 : f32 to vector<8x128xf32>
    %19 = arith.select %17, %11, %18 : vector<8x128xi1>, vector<8x128xf32>
    %c0_11 = arith.constant 0 : index
    %c0_12 = arith.constant 0 : index
    %20 = vector.load %arg7[%c0_11, %c0_12] : memref<8x1xf32, #tpu.memory_space<vmem>>, vector<8x1xf32>
    %cst_13 = arith.constant dense<0xFF800000> : vector<8xf32>
    %21 = vector.multi_reduction <maximumf>, %19, %cst_13 [1] : vector<8x128xf32> to vector<8xf32>
    %22 = vector.shape_cast %21 : vector<8xf32> to vector<8x1xf32>
    %23 = arith.maximumf %20, %22 : vector<8x1xf32>
    %24 = arith.subf %20, %23 : vector<8x1xf32>
    %25 = math.exp %24 : vector<8x1xf32>
    %26 = vector.broadcast %23 : vector<8x1xf32> to vector<8x128xf32>
    %27 = arith.subf %19, %26 : vector<8x128xf32>
    %28 = math.exp %27 : vector<8x128xf32>
    %c0_14 = arith.constant 0 : index
    %c0_15 = arith.constant 0 : index
    %29 = vector.load %arg8[%c0_14, %c0_15] : memref<8x1xf32, #tpu.memory_space<vmem>>, vector<8x1xf32>
    %30 = arith.mulf %25, %29 : vector<8x1xf32>
    %cst_16 = arith.constant dense<0.000000e+00> : vector<8xf32>
    %31 = vector.multi_reduction <add>, %28, %cst_16 [1] : vector<8x128xf32> to vector<8xf32>
    %32 = vector.shape_cast %31 : vector<8xf32> to vector<8x1xf32>
    %33 = arith.addf %30, %32 : vector<8x1xf32>
    %c0_17 = arith.constant 0 : index
    %c0_18 = arith.constant 0 : index
    %34 = vector.load %arg8[%c0_17, %c0_18] : memref<8x1xf32, #tpu.memory_space<vmem>>, vector<8x1xf32>
    tpu.vector_store %arg8[%c0_17, %c0_18], %33 {strides = array<i32>} : memref<8x1xf32, #tpu.memory_space<vmem>>, vector<8x1xf32>,
    %c0_19 = arith.constant 0 : index
    %c0_20 = arith.constant 0 : index
    %35 = vector.load %arg9[%c0_19, %c0_20] : memref<8x128xf32, #tpu.memory_space<vmem>>, vector<8x128xf32>
    %36 = vector.broadcast %25 : vector<8x1xf32> to vector<8x128xf32>
    %37 = arith.mulf %36, %35 : vector<8x128xf32>
    %cst_21 = arith.constant dense<0.000000e+00> : vector<8x128xf32>
    %38 = tpu.matmul %28, %10, %cst_21 {dimension_numbers = #tpu.dot_dimension_numbers<[1], [0], [0], [1], [0, 0, 1, 1], [], []>} : vector<8x128xf32>, vector<128x128xf32>, vector<8x128xf32> -> vector<8x128xf32>
    %39 = arith.addf %37, %38 : vector<8x128xf32>
    %c0_22 = arith.constant 0 : index
    %c0_23 = arith.constant 0 : index
    %40 = vector.load %arg9[%c0_22, %c0_23] : memref<8x128xf32, #tpu.memory_space<vmem>>, vector<8x128xf32>
    tpu.vector_store %arg9[%c0_22, %c0_23], %39 {strides = array<i32>} : memref<8x128xf32, #tpu.memory_space<vmem>>, vector<8x128xf32>,
    %c0_24 = arith.constant 0 : index
    %c0_25 = arith.constant 0 : index
    %41 = vector.load %arg7[%c0_24, %c0_25] : memref<8x1xf32, #tpu.memory_space<vmem>>, vector<8x1xf32>
    tpu.vector_store %arg7[%c0_24, %c0_25], %23 {strides = array<i32>} : memref<8x1xf32, #tpu.memory_space<vmem>>, vector<8x1xf32>,
    %c0_i32_26 = arith.constant 0 : i32
    %42 = arith.cmpi eq, %arg2, %c0_i32_26 : i32
    %43 = arith.extui %42 : i1 to i32
    %c0_i32_27 = arith.constant 0 : i32
    %44 = arith.cmpi ne, %43, %c0_i32_27 : i32
    scf.if %44 {
      %c0_28 = arith.constant 0 : index
      %c0_29 = arith.constant 0 : index
      %45 = vector.load %arg8[%c0_28, %c0_29] : memref<8x1xf32, #tpu.memory_space<vmem>>, vector<8x1xf32>
      %46 = tpu.reciprocal %45 : vector<8x1xf32> -> vector<8x1xf32>
      %c0_30 = arith.constant 0 : index
      %c0_31 = arith.constant 0 : index
      %47 = vector.load %arg9[%c0_30, %c0_31] : memref<8x128xf32, #tpu.memory_space<vmem>>, vector<8x128xf32>
      %48 = vector.broadcast %46 : vector<8x1xf32> to vector<8x128xf32>
      %49 = arith.mulf %47, %48 : vector<8x128xf32>
      %c0_32 = arith.constant 0 : index
      %c0_33 = arith.constant 0 : index
      %c0_34 = arith.constant 0 : index
      %50 = vector.load %arg6[%c0_32, %c0_33, %c0_34] : memref<1x8x128xf32, #tpu.memory_space<vmem>>, vector<1x8x128xf32>
      %51 = vector.shape_cast %50 : vector<1x8x128xf32> to vector<8x128xf32>
      %52 = vector.shape_cast %49 : vector<8x128xf32> to vector<1x8x128xf32>
      tpu.vector_store %arg6[%c0_32, %c0_33, %c0_34], %52 {strides = array<i32>} : memref<1x8x128xf32, #tpu.memory_space<vmem>>, vector<1x8x128xf32>,
    } else {
    }
    return
  }
  func.func @transform_0(%arg0: i32, %arg1: i32, %arg2: i32) -> (i32, i32, i32) {
    %c0_i32 = arith.constant 0 : i32
    %c0_i32_0 = arith.constant 0 : i32
    return %arg0, %arg1, %c0_i32 : i32, i32, i32
  }
  func.func @transform_1(%arg0: i32, %arg1: i32, %arg2: i32) -> (i32, i32, i32) {
    %c0_i32 = arith.constant 0 : i32
    %c0_i32_0 = arith.constant 0 : i32
    return %arg0, %arg2, %c0_i32 : i32, i32, i32
  }
  func.func @transform_2(%arg0: i32, %arg1: i32, %arg2: i32) -> (i32, i32, i32) {
    %c0_i32 = arith.constant 0 : i32
    %c0_i32_0 = arith.constant 0 : i32
    return %arg0, %arg2, %c0_i32 : i32, i32, i32
  }
  func.func @transform_3(%arg0: i32, %arg1: i32, %arg2: i32) -> (i32, i32, i32) {
    %c0_i32 = arith.constant 0 : i32
    %c0_i32_0 = arith.constant 0 : i32
    return %arg0, %arg1, %c0_i32 : i32, i32, i32
  }
}

</mosaic_0001>

<bundles_post_ra>
// kernel: dot_product_attention.1
= control target key start
LH: loop header
LB: loop body
LE: loop exit
PB: predicated region body
PF: predicated region fallthrough
CT: control target
= control target key end

     0   :  { %8 = vsyncpa [#allocation6], 0  ;;  %s1108_s0 = inlined_call_operand.vmem [shape: f32[2,8,128], index: 0, kind: input, shape index: {}]   ;;  %s1109_s1 = inlined_call_operand.vmem [shape: f32[2,128,128], index: 1, kind: input, shape index: {}]   ;;  %s1110_s2 = inlined_call_operand.vmem [shape: f32[2,128,128], index: 2, kind: input, shape index: {}]   ;;  %s1111_s3 = inlined_call_operand.hbm [shape: f32[2,8,128], index: 3, kind: output, shape index: {}]  }
   0x1   :  { %10 = vsyncpa [#allocation6 + $0x1], 0  ;;  %s920_s12 = smov 0   ;;  %s922_s13 = smov 0  }
   0x2   :  { %s924_s14 = smov 0   ;;  %s926_s15 = smov 0  }
   0x3   :  { %s928_s16 = smov 0   ;;  %s930_s17 = smov 0  }
   0x4 LB: > { %s629_s18 = sadd.s32 4294967295, %s893_s17   ;;  %s630_s19 = sadd.s32 4294967294, %s893_s17   ;;  %s893_s17 = sphi %s930_s17, %s16_s17   ;;  %s889_s16 = sphi %s928_s16, %s1118_s16   ;;  %s885_s15 = sphi %s926_s15, %s1117_s15   ;;  %s881_s14 = sphi %s924_s14, %s1116_s14   ;;  %s877_s13 = sphi %s922_s13, %s1115_s13   ;;  %s873_s12 = sphi %s920_s12, %s1114_s12  }
   0x5   : > { %s35_s20 = sadd.s32 1, %s889_s16  ;;  %s128_s21 = sadd.s32 1, %s881_s14 }
   0x6   : > { %p37_p0 = scmp.ge.s32.totalorder %s35_s20, 2  ;;  %p138_p1 = scmp.ne.s32.totalorder %s881_s14, %s877_s13 }
   0x7   : > { %p139_p2 = scmp.eq.s32.totalorder %s629_s18, 1  ;;  %p144_p3 = scmp.ne.s32.totalorder %s877_s13, %s873_s12 }
   0x8   : > { %s1120_s20 = smov (%p37_p0, %s35_s20), 0  ;;  %p145_p5 = scmp.eq.s32.totalorder %s630_s19, 1 }
   0x9   : > { %p960_p4 = por %p139_p2, %p138_p1  ;;  %s123_s23 = ssub.s32 %s889_s16, %s1120_s20 }
   0xa   : > { %p633_p6 = scmp.ge.s32.totalorder %s893_s17, 1  ;;  %p126_p7 = scmp.eq.s32.totalorder %s123_s23, 0 }
   0xb   : > { %p967_p8 = por %p145_p5, %p144_p3  ;;  %p199_p9 = scmp.lt.s32.totalorder %s893_s17, 3 }
   0xc   : > { %s973_s25 = scalar_select %p126_p7, %s881_s14, %s128_s21  }
   0xd   : > { %p200_p10 = pnand %p633_p6, %p199_p9 }
   0xe   : > { %p243_p11 = scmp.lt.s32.totalorder (!%p200_p10), %s885_s15, 1  ;;  %s240_s11 = sand.u32 (!%p200_p10), 1, %s877_s13  }
   0xf   : > { %203 = sbr.rel (%p200_p10) target bundleno = 865 (0x361), region = 32  ;;  %s634_s18 = sshll.u32 (!%p200_p10), %s240_s11, 3 }
  0x10   : > { %s641_s19 = sshll.u32 (!%p200_p10), %s885_s15, 7  ;;  %s242_s21 = scalar_lea.vmem (!%p200_p10), [#allocation5], %s634_s18 }
  0x11   : > { %s519_s23 = sshll.u32 (!%p200_p10), %s242_s21, 4  ;;  %s517_s28 = scalar_lea.hbm (!%p200_p10), %s1111_s3, %s641_s19  ;;  %s520_s23 = int_to_ptr.vmem [resolvable:$true] %s519_s23 }
  0x12   : > { %s505_s29 = scalar_lea.sflag (!%p200_p10), [#allocation6], %s240_s11 }
  0x14   : > { %v895_v0 = vmov 0.0   ;;  %vm896_vm0 = vmmov 0   ;;  %s979_s26 = scalar_select %p243_p11, %s885_s15, 1  ;;  %vm274_vm1 = vcmask 7168   ;;  %v897_v19 = vmov -1e+30  }
  0x15   : > { %680 = vmatprep.subr.mxu0 %v895_v0  ;;  %712 = vmatprep.mubr.msk.f32.mxu0 %vm896_vm0, %v895_v0  ;;  %275 = vst.msk [vmem:[#allocation2] sm:$0xff] %vm274_vm1, %v897_v19  ;;  %276 = vst.msk [vmem:[#allocation3] sm:$0xff] %vm274_vm1, %v895_v0  ;;  %v383_v20 = vlaneseq  ;;  %v898_v25 = vmov 0  }
  0x16   : > { %715 = vmatprep.subr.mxu1 %v895_v0  ;;  %747 = vmatprep.mubr.msk.f32.mxu1 %vm896_vm0, %v895_v0  ;;  %s644_s27 = sshll.u32 %s979_s26, 7  ;;  %s635_s4 = sshll.u32 %s979_s26, 3 }
  0x17   : > { %s989_s30 = scalar_lea.vmem %s1109_s1, %s644_s27  ;;  %s249_s7 = scalar_lea.vmem %s1108_s0, %s635_s4  ;;  %v384_v21 = vand.u32 127, %v383_v20  ;;  %809 = vset.pattern.permute.xlu0 %v898_v25  ;;  %810 = vset.pattern.permute.xlu1 %v898_v25 }
  0x18   : > { %v295_v1 = vld [vmem:[%s989_s30 + $0x78] sm:$0xff]  ;;  %v294_v2 = vld [vmem:[%s989_s30 + $0x70] sm:$0xff]  ;;  %v293_v3 = vld [vmem:[%s989_s30 + $0x68] sm:$0xff]  ;;  %s1034_s10 = scalar_lea.vmem %s1110_s2, %s644_s27  ;;  %s899_s4 = smov [#allocation5]  }
  0x19   : > { %681 = vmatpush3.xpose.msra.mxu0 %v295_v1  ;;  %v292_v4 = vld [vmem:[%s989_s30 + $0x60] sm:$0xff]  ;;  %v291_v5 = vld [vmem:[%s989_s30 + $0x58] sm:$0xff]  ;;  %v290_v6 = vld [vmem:[%s989_s30 + $0x50] sm:$0xff]  ;;  %vm387_vm2 = vcmp.lt.s32.totalorder %v384_v21, 8  ;;  %s821_s5 = sshll.u32 %s899_s4, 4  ;;  %s822_s5 = int_to_ptr.vmem [resolvable:$false] %s821_s5 }
  0x1a   : > { %682 = vmatprep.subr.mxu0 %v895_v0  ;;  %v289_v7 = vld [vmem:[%s989_s30 + $0x48] sm:$0xff]  ;;  %v288_v8 = vld [vmem:[%s989_s30 + $0x40] sm:$0xff]  ;;  %v287_v9 = vld [vmem:[%s989_s30 + $0x38] sm:$0xff]  ;;  %s823_s15 = scalar_lea.vmem %s822_s5, 256  ;;  %p824_p1 = scmp.lt.s32.totalorder %s520_s23, %s822_s5 }
  0x1b   : > { %v286_v10 = vld [vmem:[%s989_s30 + $0x30] sm:$0xff]  ;;  %v285_v11 = vld [vmem:[%s989_s30 + $0x28] sm:$0xff]  ;;  %v284_v12 = vld [vmem:[%s989_s30 + $0x20] sm:$0xff] }
  0x1c   : > { %v283_v13 = vld [vmem:[%s989_s30 + $0x18] sm:$0xff]  ;;  %v282_v14 = vld [vmem:[%s989_s30 + $0x10] sm:$0xff]  ;;  %v281_v15 = vld [vmem:[%s989_s30 + $0x8] sm:$0xff] }
  0x1d   : > { %683 = vmatpush3.xpose.msra.mxu0 %v294_v2  ;;  %v278_v16 = vld [vmem:[%s249_s7] sm:$0xff]  ;;  %v311_v26 = vld [vmem:[%s1034_s10 + $0x78] sm:$0xff]  ;;  %v310_v27 = vld [vmem:[%s1034_s10 + $0x70] sm:$0xff] }
  0x1e   : > { %684 = vmatprep.subr.mxu0 %v895_v0  ;;  %v280_v17 = vld [vmem:[%s989_s30] sm:$0xff]  ;;  %v279_v18 = vmul.f32 0.17677669, %v278_v16  ;;  %716 = vmatpush3.msra.mxu1 %v311_v26  ;;  %v309_v28 = vld [vmem:[%s1034_s10 + $0x68] sm:$0xff]  ;;  %v307_v30 = vld [vmem:[%s1034_s10 + $0x58] sm:$0xff]  ;;  %s817_s30 = scalar_lea.vmem %s520_s23, 128 }
  0x1f   : > { %717 = vmatprep.subr.mxu1 %v895_v0  ;;  %v308_v29 = vld [vmem:[%s1034_s10 + $0x60] sm:$0xff]  ;;  %v306_v31 = vld [vmem:[%s1034_s10 + $0x50] sm:$0xff]  ;;  %v305_v32 = vld [vmem:[%s1034_s10 + $0x48] sm:$0xff]  ;;  %p818_p12 = scmp.ne.s32.totalorder %s520_s23, %s817_s30  ;;  %p825_p2 = scmp.lt.s32.totalorder %s823_s15, %s817_s30 }
  0x20   : > { %718 = vmatpush3.msra.mxu1 %v310_v27  ;;  %v389_v33 = vld [vmem:[#allocation2] sm:$0xff]  ;;  %v303_v37 = vld [vmem:[%s1034_s10 + $0x38] sm:$0xff]  ;;  %v302_v39 = vld [vmem:[%s1034_s10 + $0x30] sm:$0xff] }
  0x21   : > { %685 = vmatpush3.xpose.msra.mxu0 %v293_v3  ;;  %719 = vmatprep.subr.mxu1 %v895_v0  ;;  %v304_v34 = vld [vmem:[%s1034_s10 + $0x40] sm:$0xff]  ;;  %v301_v40 = vld [vmem:[%s1034_s10 + $0x28] sm:$0xff]  ;;  %v299_v42 = vld [vmem:[%s1034_s10 + $0x18] sm:$0xff]  ;;  %p819_p13 = pnand %p818_p12, %p960_p4  ;;  %p826_p3 = por %p825_p2, %p824_p1 }
  0x22   : > { %686 = vmatprep.subr.mxu0 %v895_v0  ;;  %720 = vmatpush3.msra.mxu1 %v309_v28  ;;  %v300_v41 = vld [vmem:[%s1034_s10 + $0x20] sm:$0xff]  ;;  %v298_v43 = vld [vmem:[%s1034_s10 + $0x10] sm:$0xff]  ;;  %v297_v44 = vld [vmem:[%s1034_s10 + $0x8] sm:$0xff] }
  0x23   : > { %721 = vmatprep.subr.mxu1 %v895_v0  ;;  %v296_v45 = vld [vmem:[%s1034_s10] sm:$0xff]  ;;  %v404_v52 = vld [vmem:[#allocation3] sm:$0xff]  ;;  %p820_p0 = pneg %p819_p13 }
  0x24   : > { %722 = vmatpush3.msra.mxu1 %v308_v29 }
  0x25   : > { %687 = vmatpush3.xpose.msra.mxu0 %v292_v4  ;;  %723 = vmatprep.subr.mxu1 %v895_v0  ;;  %p827_p5 = pnand %p826_p3, %p820_p0 }
  0x26   : > { %688 = vmatprep.subr.mxu0 %v895_v0  ;;  %724 = vmatpush3.msra.mxu1 %v307_v30 }
  0x27   : > { %725 = vmatprep.subr.mxu1 %v895_v0 }
  0x28   : > { %726 = vmatpush3.msra.mxu1 %v306_v31 }
  0x29   : > { %689 = vmatpush3.xpose.msra.mxu0 %v291_v5  ;;  %727 = vmatprep.subr.mxu1 %v895_v0 }
  0x2a   : > { %690 = vmatprep.subr.mxu0 %v895_v0  ;;  %728 = vmatpush3.msra.mxu1 %v305_v32 }
  0x2b   : > { %729 = vmatprep.subr.mxu1 %v895_v0 }
  0x2c   : > { %730 = vmatpush3.msra.mxu1 %v304_v34 }
  0x2d   : > { %691 = vmatpush3.xpose.msra.mxu0 %v290_v6  ;;  %731 = vmatprep.subr.mxu1 %v895_v0 }
  0x2e   : > { %692 = vmatprep.subr.mxu0 %v895_v0  ;;  %732 = vmatpush3.msra.mxu1 %v303_v37 }
  0x2f   : > { %733 = vmatprep.subr.mxu1 %v895_v0 }
  0x30   : > { %734 = vmatpush3.msra.mxu1 %v302_v39 }
  0x31   : > { %693 = vmatpush3.xpose.msra.mxu0 %v289_v7  ;;  %735 = vmatprep.subr.mxu1 %v895_v0 }
  0x32   : > { %694 = vmatprep.subr.mxu0 %v895_v0  ;;  %736 = vmatpush3.msra.mxu1 %v301_v40 }
  0x33   : > { %737 = vmatprep.subr.mxu1 %v895_v0 }
  0x34   : > { %738 = vmatpush3.msra.mxu1 %v300_v41 }
  0x35   : > { %695 = vmatpush3.xpose.msra.mxu0 %v288_v8  ;;  %739 = vmatprep.subr.mxu1 %v895_v0 }
  0x36   : > { %696 = vmatprep.subr.mxu0 %v895_v0  ;;  %740 = vmatpush3.msra.mxu1 %v299_v42 }
  0x37   : > { %741 = vmatprep.subr.mxu1 %v895_v0 }
  0x38   : > { %742 = vmatpush3.msra.mxu1 %v298_v43 }
  0x39   : > { %697 = vmatpush3.xpose.msra.mxu0 %v287_v9  ;;  %743 = vmatprep.subr.mxu1 %v895_v0 }
  0x3a   : > { %698 = vmatprep.subr.mxu0 %v895_v0  ;;  %744 = vmatpush3.msra.mxu1 %v297_v44 }
  0x3b   : > { %745 = vmatprep.subr.mxu1 %v895_v0 }
  0x3c   : > { %746 = vmatpush3.msra.mxu1 %v296_v45 }
  0x3d   : > { %699 = vmatpush3.xpose.msra.mxu0 %v286_v10 }
  0x3e   : > { %700 = vmatprep.subr.mxu0 %v895_v0 }
  0x41   : > { %701 = vmatpush3.xpose.msra.mxu0 %v285_v11 }
  0x42   : > { %702 = vmatprep.subr.mxu0 %v895_v0 }
  0x45   : > { %703 = vmatpush3.xpose.msra.mxu0 %v284_v12 }
  0x46   : > { %704 = vmatprep.subr.mxu0 %v895_v0 }
  0x49   : > { %705 = vmatpush3.xpose.msra.mxu0 %v283_v13 }
  0x4a   : > { %706 = vmatprep.subr.mxu0 %v895_v0 }
  0x4d   : > { %707 = vmatpush3.xpose.msra.mxu0 %v282_v14 }
  0x4e   : > { %708 = vmatprep.subr.mxu0 %v895_v0 }
  0x51   : > { %709 = vmatpush3.xpose.msra.mxu0 %v281_v15 }
  0x52   : > { %710 = vmatprep.subr.mxu0 %v895_v0 }
  0x55   : > { %711 = vmatpush3.xpose.msra.mxu0 %v280_v17 }
  0x58   : > { %713 = vmatmul.mubr.f32.vlgmr.msra.gmra.mxu0 %v279_v18 }
 0x118   : > { %v378_v22 = vpop.f32.mrf.mxu0 }
 0x119   : > { %v388_v23 = vsel %vm387_vm2, %v378_v22, -1e+30 }
 0x11a   : > { %390 = vmax.xlane.f32.xlu0 %v388_v23  ;;  %v714_v24 = vpop.f32.mrf.mxu0 }
 0x1a3   : > { %v391_v35 = vpop.xlane.xlu0 %390 }
 0x1a4   : > { %v392_v36 = vmax.f32 %v389_v33, %v391_v35 }
 0x1a6   : > { %v393_v38 = vsub.f32 %v389_v33, %v392_v36  ;;  %490 = vst.msk [vmem:[#allocation2] sm:$0xff] %vm274_vm1, %v392_v36  ;;  %398 = vperm.xlu0 %809, %v392_v36  }
 0x1a8   : > { %v394_v50 = vmul.f32 1.442695, %v393_v38 }
 0x221   : > { %v399_v46 = vpop.permute.xlu0 %398 }
 0x222   : > { %v401_v47 = vsub.f32 %v388_v23, %v399_v46 }
 0x224   : > { %v402_v48 = vmul.f32 1.442695, %v401_v47 }
 0x226   : > { %811 = vpow2.f32 %v402_v48 }
 0x227   : > { %813 = vpow2.f32 %v394_v50 }
 0x233   : > { %v812_v49 = vpop.eup %811 }
 0x234   : > { %406 = vadd.xlane.f32.xlu1 %v812_v49  ;;  %748 = vmatmul.mubr.f32.vlgmr.msra.gmra.mxu1 %v812_v49  ;;  %v814_v51 = vpop.eup %813 }
 0x235   : > { %v405_v53 = vmul.f32 %v814_v51, %v404_v52 }
 0x245   : > { %414 = vperm.xlu1 %810, %v814_v51  }
 0x2bd   : > { %v407_v54 = vpop.xlane.xlu1 %406 }
 0x2be   : > { %v408_v55 = vadd.f32 %v407_v54, %v405_v53 }
 0x2c0   : > { %410 = vst.msk [vmem:[#allocation3] sm:$0xff] %vm274_vm1, %v408_v55 }
 0x2c1   : > { %v415_v60 = vpop.permute.xlu1 %414 }
 0x2c2   : > { %v417_v61 = vmul.f32 0.0, %v415_v60 }
 0x2c7   : > { %v494_v56 = vld [vmem:[#allocation3] sm:$0xff] }
 0x2c8   : > { %815 = vrcp.f32 %v494_v56 }
 0x2d5   : > { %v816_v57 = vpop.eup %815 }
 0x2d6   : > { %499 = vperm.xlu1 %810, %v816_v57  }
 0x2f4   : > { %v484_v58 = vpop.f32.mrf.mxu1 }
 0x2f5   : > { %v488_v62 = vadd.f32 %v484_v58, %v417_v61 }
 0x2f6   : > { %v749_v59 = vpop.f32.mrf.mxu1 }
 0x351   : > { %v500_v63 = vpop.permute.xlu1 %499 }
 0x352   : > { %v502_v0 = vmul.f32 %v500_v63, %v488_v62 }
 0x354   : > { %503 = vst [vmem:[%s242_s21] sm:$0xff] %v502_v0 }
 0x355   : > { %830 = shalt.err (!%p827_p5)
}
 0x356   : > { %s831_s6 = scalar_lea.hbm %s517_s28, 128  ;;  %s835_s9 = scalar_lea.hbm %s1111_s3, 256 }
 0x357   : > { %p832_p6 = scmp.ne.s32.totalorder %s517_s28, %s831_s6  ;;  %p836_p10 = scmp.lt.s32.totalorder %s517_s28, %s1111_s3 }
 0x358   : > { %p837_p11 = scmp.lt.s32.totalorder %s835_s9, %s831_s6 }
 0x359   : > { %p833_p7 = pnand %p832_p6, %p960_p4 }
 0x35a   : > { %p838_p12 = por %p837_p11, %p836_p10 }
 0x35b   : > { %p834_p9 = pneg %p833_p7 }
 0x35d   : > { %p839_p13 = pnand %p838_p12, %p834_p9 }
 0x35f   : > { %842 = shalt.err (!%p839_p13)
}
 0x360   : > { %750 = dma.vmem_to_hbm [thread:$0]  (%p960_p4), %s520_s23, 128, %s517_s28, %s505_s29  }
 0x361 PF: > { %p756_p0 = scmp.ge.s32.totalorder %s893_s17, 2  ;;  %s531_s18 = sand.u32 1, %s873_s12  }
 0x362   : > { %s532_s19 = scalar_lea.sflag [#allocation6], %s531_s18 }
 0x363   : > { %p753_p1 = pnand %p756_p0, %p967_p8 }
 0x365   : > { %p754_p2 = pneg %p753_p1 }
 0x367   : > { %868 = dma.done.wait (%p754_p2), %s532_s19, 128  }
 0x368   : > { %870 = vsyncadd (%p754_p2), %s532_s19, 4294967168  ;;  %s16_s17 = sadd.s32 1, %s893_s17   ;;  %s1114_s12 = smov %s877_s13 }
 0x369   : > { %p13_p3 = scmp.ge.s32.totalorder %s16_s17, 4   ;;  %s1115_s13 = smov %s881_s14 }
 0x36a   : > { %s1116_s14 = smov %s973_s25  ;;  %s1117_s15 = smov %s889_s16 }
 0x36b   : > { %s1118_s16 = smov %s1120_s20  ;;  %15 = sbr.rel (!%p13_p3) target bundleno = 4 (0x4), region = 81 }
 0x370   :  { %537 = vsyncpa [#allocation6], 1 }
 0x371   :  { %539 = vsyncpa [#allocation6 + $0x1], 1 }

</bundles_post_ra>
